<compile_context>
chip_gen: v6e
topology: v6e:2x2x1
jax: 0.10.0
libtpu: 0.0.40
codegen_flags: <defaults>
</compile_context>

<pallas_src>
import jax
import jax.numpy as jnp
from jax.experimental import pallas as pl
from jax.experimental.pallas import tpu as pltpu

_LANE = 128
_TILE_ROWS = 4096  # 2 MiB f32 blocks


def _sigmoid_add_kernel(x_ref, o_ref):
    xf = x_ref[...].astype(jnp.float32)
    # y = x + sigmoid(x); exp/recip go to the EUP slot, add/mul to the VPU.
    o_ref[...] = (xf + jax.nn.sigmoid(xf)).astype(o_ref.dtype)


def sigmoid_add(x: jax.Array) -> jax.Array:
    """Applies y = x + sigmoid(x) via a Pallas TPU kernel. Accepts any shape."""
    orig_shape = x.shape
    n = x.size

    # Flatten and pad up to a multiple of 128 lanes (no-op when already aligned).
    n_pad = pl.cdiv(n, _LANE) * _LANE
    x_flat = x.reshape(-1)
    if n_pad != n:
        x_flat = jnp.pad(x_flat, (0, n_pad - n))
    rows = n_pad // _LANE
    x2d = x_flat.reshape(rows, _LANE)

    # Block rows: big blocks for large inputs; for small inputs a single block
    # rounded up to the sublane packing multiple (8 for f32, 16 for bf16).
    sublane_mult = 16 if x.dtype == jnp.bfloat16 else 8
    tile_rows = _TILE_ROWS
    if rows < tile_rows:
        tile_rows = max(sublane_mult, pl.cdiv(rows, sublane_mult) * sublane_mult)
    grid = (pl.cdiv(rows, tile_rows),)

    out2d = pl.pallas_call(
        _sigmoid_add_kernel,
        out_shape=jax.ShapeDtypeStruct((rows, _LANE), x.dtype),
        grid=grid,
        in_specs=[pl.BlockSpec((tile_rows, _LANE), lambda i: (i, 0))],
        out_specs=pl.BlockSpec((tile_rows, _LANE), lambda i: (i, 0)),
        compiler_params=pltpu.CompilerParams(
            dimension_semantics=("parallel",),
        ),
    )(x2d)

    out_flat = out2d.reshape(-1)
    if n_pad != n:
        out_flat = out_flat[:n]
    return out_flat.reshape(orig_shape)


if __name__ == "__main__":
    key = jax.random.PRNGKey(0)
    # NCHW input consistent with the test module: (2, 4, 16, 16)
    x = jax.random.normal(key, (2, 4, 16, 16), dtype=jnp.float32)

    f = jax.jit(sigmoid_add)
    y = jax.block_until_ready(f(x))

    # Correctness check against the plain JAX reference: y = x + sigmoid(x)
    y_ref = x + jax.nn.sigmoid(x)
    assert y.shape == x.shape and y.dtype == x.dtype
    assert jnp.allclose(y, y_ref, atol=1e-6, rtol=1e-6), "mismatch vs reference"

    print("KERNEL_OK")
</pallas_src>

<mosaic_0001>
module attributes {stable_mosaic.version = 11 : i64} {
  func.func @_sigmoid_add_kernel(%arg0: i32, %arg1: memref<16x128xf32, #tpu.memory_space<vmem>>, %arg2: memref<16x128xf32, #tpu.memory_space<vmem>>) attributes {dimension_semantics = [#tpu.dimension_semantics<parallel>], iteration_bounds = array<i64: 1>, scalar_prefetch = 0 : i64, scratch_operands = 0 : i64, tpu.core_type = #tpu.core_type<tc>, window_params = [{transform_indices = @transform_0, window_bounds = array<i64: 16, 128>}, {transform_indices = @transform_1, window_bounds = array<i64: 16, 128>}]} {
    %c0 = arith.constant 0 : index
    %c0_0 = arith.constant 0 : index
    %0 = vector.load %arg1[%c0, %c0_0] : memref<16x128xf32, #tpu.memory_space<vmem>>, vector<16x128xf32>
    %1 = arith.negf %0 : vector<16x128xf32>
    %2 = math.exp %1 : vector<16x128xf32>
    %cst = arith.constant 1.000000e+00 : f32
    %3 = vector.broadcast %cst : f32 to vector<16x128xf32>
    %4 = arith.addf %3, %2 : vector<16x128xf32>
    %5 = arith.divf %3, %4 : vector<16x128xf32>
    %6 = arith.addf %0, %5 : vector<16x128xf32>
    %c0_1 = arith.constant 0 : index
    %c0_2 = arith.constant 0 : index
    %7 = vector.load %arg2[%c0_1, %c0_2] : memref<16x128xf32, #tpu.memory_space<vmem>>, vector<16x128xf32>
    tpu.vector_store %arg2[%c0_1, %c0_2], %6 {strides = array<i32>} : memref<16x128xf32, #tpu.memory_space<vmem>>, vector<16x128xf32>,
    return
  }
  func.func @transform_0(%arg0: i32) -> (i32, i32) {
    %c0_i32 = arith.constant 0 : i32
    %c0_i32_0 = arith.constant 0 : i32
    return %arg0, %c0_i32 : i32, i32
  }
  func.func @transform_1(%arg0: i32) -> (i32, i32) {
    %c0_i32 = arith.constant 0 : i32
    %c0_i32_0 = arith.constant 0 : i32
    return %arg0, %c0_i32 : i32, i32
  }
}

</mosaic_0001>

<bundles_post_ra>
// kernel: sigmoid_add.1
= control target key start
LH: loop header
LB: loop body
LE: loop exit
PB: predicated region body
PF: predicated region fallthrough
CT: control target
= control target key end

     0   :  { %s62_s0 = inlined_call_operand.vmem [shape: f32[16,128], index: 0, kind: input, shape index: {}]   ;;  %s63_s1 = inlined_call_operand.vmem [shape: f32[16,128], index: 1, kind: output, shape index: {}]  }
   0x1   :  { %v8_v0 = vld [vmem:[%s62_s0] sm:$0xff]  ;;  %v9_v1 = vld [vmem:[%s62_s0 + $0x8] sm:$0xff] }
   0x2   :  { %v30_v2 = vmul.f32 -1.442695, %v8_v0  ;;  %v31_v3 = vmul.f32 -1.442695, %v9_v1 }
   0x4   :  { %32 = vpow2.f32 %v30_v2 }
   0x5   :  { %34 = vpow2.f32 %v31_v3 }
  0x11   :  { %v33_v4 = vpop.eup %32 }
  0x12   :  { %v35_v5 = vpop.eup %34  ;;  %v16_v6 = vadd.f32 1.0, %v33_v4 }
  0x13   :  { %v17_v7 = vadd.f32 1.0, %v35_v5 }
  0x14   :  { %36 = vrcp.f32 %v16_v6 }
  0x15   :  { %38 = vrcp.f32 %v17_v7 }
  0x21   :  { %v37_v8 = vpop.eup %36 }
  0x22   :  { %v39_v9 = vpop.eup %38  ;;  %v22_v10 = vadd.f32 %v37_v8, %v8_v0 }
  0x23   :  { %v23_v11 = vadd.f32 %v39_v9, %v9_v1 }
  0x24   :  { %24 = vst [vmem:[%s63_s1] sm:$0xff] %v22_v10 }
  0x25   :  { %25 = vst [vmem:[%s63_s1 + $0x8] sm:$0xff] %v23_v11 }

</bundles_post_ra>
